<compile_context>
chip_gen: v7x
topology: tpu7x:2x2x1
jax: 0.10.0
libtpu: 0.0.40
codegen_flags: <defaults>
</compile_context>

<pallas_src>
import functools

import jax
import jax.numpy as jnp
from jax.experimental import pallas as pl
from jax.experimental.pallas import tpu as pltpu


# ----------------------------- VMEM sizing ------------------------------------


def _vmem_config():
    """(working-set budget, scoped vmem limit) in bytes, per TPU generation."""
    try:
        cap = int(pltpu.get_tpu_info().vmem_capacity_bytes)
    except Exception:  # not on TPU / query unavailable -> conservative (v7x-safe)
        cap = 64 * 1024 * 1024
    if cap >= 100 * 1024 * 1024:            # v5e / v6e: 128 MiB VMEM
        return 64 * 1024 * 1024, 100 * 1024 * 1024
    return 24 * 1024 * 1024, 46 * 1024 * 1024   # v7x: 64 MiB per TensorCore


def _batched_bytes_per_elem(dim: int) -> int:
    # double-buffered (dim,dim) output block + ~2 f32 temporaries + tiny input rows
    return 16 * dim * dim + 64 * dim + 2048


def _pick_tb(bsize: int, dim: int, budget: int) -> int:
    tb = max(1, min(budget // _batched_bytes_per_elem(dim), 4096, bsize))
    if bsize >= 3:
        tb = min(tb, max(1, bsize // 3))    # >=3 grid steps: pipeline overlap + megacore
    elif bsize == 2:
        tb = 1                              # v7x: one step per TensorCore
    return max(1, tb)


def _pick_tj(dim: int, budget: int) -> int:
    per_row = 16 * dim + 1024               # double-buffered out rows + temps
    tj = max(8, (budget // per_row) // 8 * 8)
    tj = min(tj, 2048)
    dim8 = pl.cdiv(dim, 8) * 8
    tj = min(tj, dim8)
    if dim8 > 8:                             # keep >=2 j-steps when possible (v7x, B==1)
        tj = min(tj, max(8, pl.cdiv(pl.cdiv(dim8, 2), 8) * 8))
    return tj


# ----------------------------- host-side rowsum --------------------------------


def _abs_rowsum(scores: jax.Array) -> jax.Array:
    """rowsum[b, i] = sum_k |s[b,i] - s[b,k]| in O(n log n) via sort + cumsum."""
    n = scores.shape[-1]
    order = jnp.argsort(scores, axis=-1)
    s_sorted = jnp.take_along_axis(scores, order, axis=-1)
    csum = jnp.cumsum(s_sorted, axis=-1)
    total = csum[..., -1:]
    p = jnp.arange(n, dtype=scores.dtype)
    rs_sorted = s_sorted * (2.0 * p + 2.0 - float(n)) + total - 2.0 * csum
    inv = jnp.argsort(order, axis=-1)        # inverse permutation
    return jnp.take_along_axis(rs_sorted, inv, axis=-1)


# ----------------------------- kernels -----------------------------------------


def _sorting_kernel_batched(s_row_ref, rowsum_ref, out_ref, *, inv_tau: float, n: int):
    # s_row_ref : (TB, 1, n)  scores, lane-oriented (index i)
    # rowsum_ref: (TB, 1, n)  sum_k |s_i - s_k| / tau, lane-oriented (index i)
    # out_ref   : (TB, n, n)  P_hat[b, j, i]
    s_row = s_row_ref[...]
    rowsum = rowsum_ref[...]

    # scaling[j] = n - 1 - 2j, generated in-kernel with 1/tau folded in.
    ranks = jax.lax.broadcasted_iota(jnp.int32, (1, n, 1), 1).astype(jnp.float32)
    scaling_col = (float(n - 1) - 2.0 * ranks) * inv_tau          # (1, n, 1)

    logits = scaling_col * s_row - rowsum                         # (TB, n, n) = P_max/tau
    m = jnp.max(logits, axis=-1, keepdims=True)
    e = jnp.exp(logits - m)
    denom = jnp.sum(e, axis=-1, keepdims=True)
    out_ref[...] = e * pl.reciprocal(denom, approx=True)


def _sorting_kernel_tiled(s_row_ref, rowsum_ref, out_ref, *, inv_tau: float, n: int, tj: int):
    # s_row_ref : (1, 1, n)   scores for this batch element (lane-oriented, index i)
    # rowsum_ref: (1, 1, n)   sum_k |s_i - s_k| / tau for this batch element
    # out_ref   : (1, TJ, n)  rows [j0, j0+TJ) of P_hat (padded j rows sliced by wrapper)
    s_row = s_row_ref[0]                                          # (1, n)
    rowsum = rowsum_ref[0]                                        # (1, n)

    j0 = pl.program_id(1) * tj
    ranks = (j0 + jax.lax.broadcasted_iota(jnp.int32, (tj, 1), 0)).astype(jnp.float32)
    scaling_col = (float(n - 1) - 2.0 * ranks) * inv_tau          # (TJ, 1)

    logits = scaling_col * s_row - rowsum                         # (TJ, n) = P_max/tau
    m = jnp.max(logits, axis=-1, keepdims=True)
    e = jnp.exp(logits - m)
    denom = jnp.sum(e, axis=-1, keepdims=True)
    out_ref[0] = e * pl.reciprocal(denom, approx=True)


# ----------------------------- wrappers -----------------------------------------


def _sorting_batched(scores: jax.Array, tau: float) -> jax.Array:
    bsize, dim = scores.shape
    inv_tau = 1.0 / float(tau)
    budget, limit = _vmem_config()
    tb = _pick_tb(bsize, dim, budget)
    b_pad = pl.cdiv(bsize, tb) * tb

    rowsum = _abs_rowsum(scores) * inv_tau
    if b_pad != bsize:
        pad = ((0, b_pad - bsize), (0, 0))
        scores = jnp.pad(scores, pad)
        rowsum = jnp.pad(rowsum, pad)
    s_row = scores.reshape(b_pad, 1, dim)      # wrapper reshapes are free
    r_row = rowsum.reshape(b_pad, 1, dim)

    out = pl.pallas_call(
        functools.partial(_sorting_kernel_batched, inv_tau=inv_tau, n=dim),
        out_shape=jax.ShapeDtypeStruct((b_pad, dim, dim), jnp.float32),
        grid_spec=pltpu.PrefetchScalarGridSpec(
            num_scalar_prefetch=0,
            grid=(b_pad // tb,),
            in_specs=[
                pl.BlockSpec((tb, 1, dim), lambda b: (b, 0, 0)),
                pl.BlockSpec((tb, 1, dim), lambda b: (b, 0, 0)),
            ],
            out_specs=pl.BlockSpec((tb, dim, dim), lambda b: (b, 0, 0)),
        ),
        compiler_params=pltpu.CompilerParams(
            dimension_semantics=("parallel",),
            vmem_limit_bytes=limit),
    )(s_row, r_row)
    return out[:bsize] if b_pad != bsize else out


def _sorting_tiled(scores: jax.Array, tau: float, *, tj: int | None = None) -> jax.Array:
    bsize, dim = scores.shape
    inv_tau = 1.0 / float(tau)
    budget, limit = _vmem_config()
    if tj is None:
        tj = _pick_tj(dim, budget)
    assert tj % 8 == 0
    j_pad = pl.cdiv(dim, tj) * tj              # pad row axis only; softmax axis untouched

    rowsum = _abs_rowsum(scores) * inv_tau
    s_row = scores.reshape(bsize, 1, dim)
    r_row = rowsum.reshape(bsize, 1, dim)

    out = pl.pallas_call(
        functools.partial(_sorting_kernel_tiled, inv_tau=inv_tau, n=dim, tj=tj),
        out_shape=jax.ShapeDtypeStruct((bsize, j_pad, dim), jnp.float32),
        grid_spec=pltpu.PrefetchScalarGridSpec(
            num_scalar_prefetch=0,
            grid=(bsize, j_pad // tj),
            in_specs=[
                pl.BlockSpec((1, 1, dim), lambda b, j: (b, 0, 0)),
                pl.BlockSpec((1, 1, dim), lambda b, j: (b, 0, 0)),
            ],
            out_specs=pl.BlockSpec((1, tj, dim), lambda b, j: (b, j, 0)),
        ),
        compiler_params=pltpu.CompilerParams(
            dimension_semantics=("parallel", "parallel"),
            vmem_limit_bytes=limit),
    )(s_row, r_row)
    return out[:, :dim, :] if j_pad != dim else out


def sorting_operator(scores: jax.Array, tau: float = 1.0, hard: bool = False) -> jax.Array:
    """scores: (B, n) (or (B, n, 1)) -> P_hat: (B, n, n) float32."""
    if scores.ndim == 3 and scores.shape[-1] == 1:
        scores = scores[..., 0]
    bsize, dim = scores.shape
    scores = scores.astype(jnp.float32)

    budget, _ = _vmem_config()
    if _batched_bytes_per_elem(dim) > budget:
        p_hat = _sorting_tiled(scores, tau)        # large n: row-tiled, both axes parallel
    else:
        p_hat = _sorting_batched(scores, tau)      # small n: TB batch elements per step

    if hard:
        # Straight-through hard permutation (plain-JAX glue; matches torch's scatter of
        # 1s at argmax with first-max tie-breaking).
        p = jax.nn.one_hot(jnp.argmax(p_hat, axis=-1), dim, dtype=p_hat.dtype)
        p_hat = jax.lax.stop_gradient(p - p_hat) + p_hat
    return p_hat


# ----------------------------- reference & test ---------------------------------


def _reference(scores: jax.Array, tau: float = 1.0) -> jax.Array:
    # Pure-JAX mirror of the PyTorch code (B = A @ 1 1^T has all columns == rowsum).
    s = scores.astype(jnp.float32)[..., None]                       # (B, n, 1)
    dim = s.shape[1]
    a = jnp.abs(s - jnp.transpose(s, (0, 2, 1)))                    # (B, n, n)
    bmat = jnp.sum(a, axis=-1, keepdims=True)                       # (B, n, 1)
    scaling = (dim - 1 - 2 * jnp.arange(dim)).astype(jnp.float32)
    c = s * scaling[None, None, :]                                  # (B, n, n)
    p_max = jnp.transpose(c - bmat, (0, 2, 1))
    return jax.nn.softmax(p_max / tau, axis=-1)


if __name__ == "__main__":
    key = jax.random.PRNGKey(0)
    k1, k2, k3 = jax.random.split(key, 3)

    # Small-n / batched path.
    B, n = 8, 16
    scores = jax.random.normal(k1, (B, n), dtype=jnp.float32)
    out = sorting_operator(scores, tau=1.0, hard=False)
    jax.block_until_ready(out)
    ref = _reference(scores, tau=1.0)
    assert out.shape == (B, n, n)
    assert jnp.allclose(out, ref, atol=2e-3, rtol=2e-3), "batched path mismatch vs reference"

    # Straight-through hard path (plain-JAX glue on top of the kernel output).
    out_hard = sorting_operator(scores, tau=1.0, hard=True)
    jax.block_until_ready(out_hard)
    assert out_hard.shape == (B, n, n)
    assert jnp.allclose(jnp.sum(out_hard, axis=-1), 1.0, atol=1e-4)

    # Row-tiled large-n path, exercised at a small shape by forcing the tile size.
    B2, n2 = 2, 256
    scores2 = jax.random.normal(k2, (B2, n2), dtype=jnp.float32)
    out2 = _sorting_tiled(scores2, tau=0.7, tj=64)
    jax.block_until_ready(out2)
    ref2 = _reference(scores2, tau=0.7)
    assert out2.shape == (B2, n2, n2)
    assert jnp.allclose(out2, ref2, atol=2e-3, rtol=2e-3), "tiled path mismatch vs reference"

    # Tiled path with n not a multiple of 8 (j axis padded internally, then sliced).
    B3, n3 = 2, 100
    scores3 = jax.random.normal(k3, (B3, n3), dtype=jnp.float32)
    out3 = _sorting_tiled(scores3, tau=1.0, tj=24)
    jax.block_until_ready(out3)
    ref3 = _reference(scores3, tau=1.0)
    assert out3.shape == (B3, n3, n3)
    assert jnp.allclose(out3, ref3, atol=2e-3, rtol=2e-3), "padded-j tiled path mismatch"

    print("KERNEL_OK")
</pallas_src>

<mosaic_0001>
module attributes {stable_mosaic.version = 11 : i64} {
  func.func @_sorting_kernel_batched(%arg0: i32, %arg1: memref<2x1x16xf32, #tpu.memory_space<vmem>>, %arg2: memref<2x1x16xf32, #tpu.memory_space<vmem>>, %arg3: memref<2x16x16xf32, #tpu.memory_space<vmem>>) attributes {dimension_semantics = [#tpu.dimension_semantics<parallel>], iteration_bounds = array<i64: 4>, scalar_prefetch = 0 : i64, scratch_operands = 0 : i64, tpu.core_type = #tpu.core_type<tc>, window_params = [{transform_indices = @transform_0, window_bounds = array<i64: 2, 1, 16>}, {transform_indices = @transform_1, window_bounds = array<i64: 2, 1, 16>}, {transform_indices = @transform_2, window_bounds = array<i64: 2, 16, 16>}]} {
    %c0 = arith.constant 0 : index
    %c0_0 = arith.constant 0 : index
    %c0_1 = arith.constant 0 : index
    %0 = vector.load %arg1[%c0, %c0_0, %c0_1] : memref<2x1x16xf32, #tpu.memory_space<vmem>>, vector<2x1x16xf32>
    %c0_2 = arith.constant 0 : index
    %c0_3 = arith.constant 0 : index
    %c0_4 = arith.constant 0 : index
    %1 = vector.load %arg2[%c0_2, %c0_3, %c0_4] : memref<2x1x16xf32, #tpu.memory_space<vmem>>, vector<2x1x16xf32>
    %2 = tpu.iota {dimensions = array<i32: 1>} : vector<1x16x1xi32>
    %3 = arith.sitofp %2 : vector<1x16x1xi32> to vector<1x16x1xf32>
    %cst = arith.constant 2.000000e+00 : f32
    %4 = vector.broadcast %cst : f32 to vector<1x16x1xf32>
    %5 = arith.mulf %4, %3 : vector<1x16x1xf32>
    %cst_5 = arith.constant 1.500000e+01 : f32
    %6 = vector.broadcast %cst_5 : f32 to vector<1x16x1xf32>
    %7 = arith.subf %6, %5 : vector<1x16x1xf32>
    %cst_6 = arith.constant 1.000000e+00 : f32
    %8 = vector.broadcast %cst_6 : f32 to vector<1x16x1xf32>
    %9 = arith.mulf %7, %8 : vector<1x16x1xf32>
    %10 = vector.broadcast %9 : vector<1x16x1xf32> to vector<2x16x16xf32>
    %11 = vector.broadcast %0 : vector<2x1x16xf32> to vector<2x16x16xf32>
    %12 = arith.mulf %10, %11 : vector<2x16x16xf32>
    %13 = vector.broadcast %1 : vector<2x1x16xf32> to vector<2x16x16xf32>
    %14 = arith.subf %12, %13 : vector<2x16x16xf32>
    %cst_7 = arith.constant dense<0xFF800000> : vector<2x16xf32>
    %15 = vector.multi_reduction <maximumf>, %14, %cst_7 [2] : vector<2x16x16xf32> to vector<2x16xf32>
    %16 = vector.shape_cast %15 : vector<2x16xf32> to vector<2x16x1xf32>
    %17 = vector.broadcast %16 : vector<2x16x1xf32> to vector<2x16x16xf32>
    %18 = arith.subf %14, %17 : vector<2x16x16xf32>
    %19 = math.exp %18 : vector<2x16x16xf32>
    %cst_8 = arith.constant dense<0.000000e+00> : vector<2x16xf32>
    %20 = vector.multi_reduction <add>, %19, %cst_8 [2] : vector<2x16x16xf32> to vector<2x16xf32>
    %21 = vector.shape_cast %20 : vector<2x16xf32> to vector<2x16x1xf32>
    %22 = tpu.reciprocal %21 {approx = true} : vector<2x16x1xf32> -> vector<2x16x1xf32>
    %23 = vector.broadcast %22 : vector<2x16x1xf32> to vector<2x16x16xf32>
    %24 = arith.mulf %19, %23 : vector<2x16x16xf32>
    %c0_9 = arith.constant 0 : index
    %c0_10 = arith.constant 0 : index
    %c0_11 = arith.constant 0 : index
    %25 = vector.load %arg3[%c0_9, %c0_10, %c0_11] : memref<2x16x16xf32, #tpu.memory_space<vmem>>, vector<2x16x16xf32>
    tpu.vector_store %arg3[%c0_9, %c0_10, %c0_11], %24 {strides = array<i32>} : memref<2x16x16xf32, #tpu.memory_space<vmem>>, vector<2x16x16xf32>,
    return
  }
  func.func @transform_0(%arg0: i32) -> (i32, i32, i32) {
    %c0_i32 = arith.constant 0 : i32
    %c0_i32_0 = arith.constant 0 : i32
    %c0_i32_1 = arith.constant 0 : i32
    return %arg0, %c0_i32, %c0_i32_0 : i32, i32, i32
  }
  func.func @transform_1(%arg0: i32) -> (i32, i32, i32) {
    %c0_i32 = arith.constant 0 : i32
    %c0_i32_0 = arith.constant 0 : i32
    %c0_i32_1 = arith.constant 0 : i32
    return %arg0, %c0_i32, %c0_i32_0 : i32, i32, i32
  }
  func.func @transform_2(%arg0: i32) -> (i32, i32, i32) {
    %c0_i32 = arith.constant 0 : i32
    %c0_i32_0 = arith.constant 0 : i32
    %c0_i32_1 = arith.constant 0 : i32
    return %arg0, %c0_i32, %c0_i32_0 : i32, i32, i32
  }
}

</mosaic_0001>

<bundles_post_ra>
// kernel: tpu_custom_call.1
= control target key start
LH: loop header
LB: loop body
LE: loop exit
PB: predicated region body
PF: predicated region fallthrough
CT: control target
= control target key end

     0   :  { %7 = vsyncpa [#allocation3], 0  ;;  %s896_s0 = inlined_call_operand.hbm [shape: f32[8,1,16], index: 0, kind: input, shape index: {}]   ;;  %s897_s1 = inlined_call_operand.hbm [shape: f32[8,1,16], index: 1, kind: input, shape index: {}]   ;;  %s898_s2 = inlined_call_operand.hbm [shape: f32[8,16,16], index: 2, kind: output, shape index: {}]  }
   0x1   :  { %9 = vsyncpa [#allocation3 + $0x1], 0 }
   0x2   :  { %10 = vsyncpa [#allocation6], 0 }
   0x3   :  { %12 = vsyncpa [#allocation6 + $0x1], 0 }
   0x4   :  { %13 = vsyncpa [#allocation4], 0 }
   0x5   :  { %15 = vsyncpa [#allocation4 + $0x1], 0  ;;  %s662_s9 = smov 0   ;;  %s664_s10 = smov 0  }
   0x6   :  { %s666_s11 = smov 0   ;;  %s668_s12 = smov 0  }
   0x7 LB: > { %s683_s13 = sadd.s32 4294967295, %s638_s12   ;;  %s410_s14 = sadd.s32 4294967294, %s638_s12   ;;  %s638_s12 = sphi %s668_s12, %s913_s12   ;;  %s634_s11 = sphi %s666_s11, %s912_s11   ;;  %s630_s10 = sphi %s664_s10, %s911_s10   ;;  %s626_s9 = sphi %s662_s9, %s910_s9  }
   0x8   : > { %s687_s15 = sadd.s32 1, %s638_s12   ;;  %s28_s16 = sadd.s32 1, %s634_s11 }
   0x9   : > { %s25_s17 = ssub.s32 %s638_s12, %s687_s15  ;;  %p35_p0 = scmp.ne.s32.totalorder %s634_s11, %s630_s10 }
   0xa   : > { %p26_p1 = scmp.eq.s32.totalorder %s25_s17, 0  ;;  %p36_p2 = scmp.eq.s32.totalorder %s638_s12, 0 }
   0xb   : > { %p41_p3 = scmp.ne.s32.totalorder %s630_s10, %s626_s9  ;;  %p42_p4 = scmp.eq.s32.totalorder %s683_s13, 0 }
   0xc   : > { %s699_s18 = scalar_select %p26_p1, %s634_s11, %s28_s16  }
   0xd   : > { %p701_p5 = por %p36_p2, %p35_p0  ;;  %p705_p6 = por %p42_p4, %p41_p3 }
   0xe   : > { %p91_p7 = scmp.eq.s32.totalorder %s683_s13, 3  ;;  %p97_p8 = scmp.eq.s32.totalorder %s410_s14, 3 }
   0xf   : > { %s902_s20 = scalar_select %p705_p6, 1, 0 }
  0x10   : > { %p454_p9 = scmp.lt.s32.totalorder %s638_s12, 4  ;;  %p711_p10 = por %p91_p7, %p35_p0 }
  0x11   : > { %p715_p11 = por %p97_p8, %p41_p3  ;;  %s720_s23 = sand.u32 1, %s634_s11  }
  0x12   : > { %s903_s21 = scalar_select %p711_p10, 1, 0 }
  0x13   : > { %s904_s22 = scalar_select %p715_p11, 1, 0 }
  0x14   : > { %s433_s24 = sshll.u32 %s638_s12, 5  ;;  %s413_s25 = sshll.u32 %s720_s23, 1 }
  0x15   : > { %s729_s28 = scalar_lea.hbm %s896_s0, %s433_s24  ;;  %s121_s29 = scalar_lea.vmem [#allocation2], %s413_s25 }
  0x16   : > { %s128_s30 = sshll.u32 %s121_s29, 4  ;;  %p735_p12 = pnand %p454_p9, %p701_p5  ;;  %s739_s30 = int_to_ptr.vmem [resolvable:$true] %s128_s30 }
  0x17   : > { %s118_s4 = scalar_lea.sflag [#allocation3], %s720_s23  ;;  %s508_s5 = scalar_lea.hbm %s729_s28, 32 }
  0x18   : > { %p509_p13 = scmp.ne.s32.totalorder %s729_s28, %s508_s5  ;;  %p510_p0 = pneg %p735_p12 }
  0x19   : > { %s513_s8 = scalar_lea.hbm %s896_s0, 128  ;;  %p514_p3 = scmp.lt.u32.totalorder %s729_s28, %s896_s0 }
  0x1a   : > { %p511_p1 = pnand %p510_p0, %p509_p13  ;;  %p515_p4 = scmp.lt.u32.totalorder %s513_s8, %s508_s5 }
  0x1b   : > { %p517_p7 = scmp.lt.u32.totalorder %s508_s5, %s729_s28 }
  0x1c   : > { %p512_p2 = pneg %p511_p1  ;;  %p516_p5 = por %p515_p4, %p514_p3 }
  0x1e   : > { %p518_p8 = por %p517_p7, %p516_p5 }
  0x20   : > { %p519_p9 = pnand %p518_p8, %p512_p2 }
  0x22   : > { %522 = shalt.err (!%p519_p9)
}
  0x23   : > { %s523_s17 = scalar_lea.vmem %s739_s30, 32  ;;  %s640_s19 = smov [#allocation2]  }
  0x24   : > { %p524_p13 = scmp.ne.s32.totalorder %s739_s30, %s523_s17  ;;  %s528_s26 = sshll.u32 %s640_s19, 4  ;;  %s529_s26 = int_to_ptr.vmem [resolvable:$false] %s528_s26 }
  0x25   : > { %s530_s27 = scalar_lea.vmem %s529_s26, 64  ;;  %p531_p10 = scmp.lt.s32.totalorder %s739_s30, %s529_s26 }
  0x26   : > { %p526_p1 = pnand %p524_p13, %p510_p0  ;;  %p532_p3 = scmp.lt.s32.totalorder %s530_s27, %s523_s17 }
  0x28   : > { %p527_p11 = pneg %p526_p1  ;;  %p533_p4 = por %p532_p3, %p531_p10 }
  0x2a   : > { %p534_p5 = pnand %p533_p4, %p527_p11 }
  0x2c   : > { %537 = shalt.err (!%p534_p5)
}
  0x2d   : > { %s641_s29 = smov 16   ;;  %s642_s5 = smov 1  }
  0x2e   : > { %446 = dma.hbm_to_vmem [thread:$0]  (!%p735_p12), %s729_s28, 32, %s739_s30, %s118_s4, %s641_s29, %s641_s29, %s642_s5  }
  0x2f   : > { %p419_p10 = scmp.ge.s32.totalorder %s638_s12, 1  ;;  %p157_p11 = scmp.lt.s32.totalorder %s638_s12, 5 }
  0x30   : > { %s783_s14 = scalar_lea.hbm %s897_s1, %s433_s24  ;;  %s142_s16 = scalar_lea.vmem [#allocation5], %s413_s25 }
  0x31   : > { %p774_p2 = pnand %p419_p10, %p157_p11  ;;  %s149_s17 = sshll.u32 %s142_s16, 4  ;;  %s787_s17 = int_to_ptr.vmem [resolvable:$true] %s149_s17 }
  0x32   : > { %s139_s28 = scalar_lea.sflag [#allocation6], %s720_s23  ;;  %s538_s30 = scalar_lea.hbm %s783_s14, 32 }
  0x33   : > { %p539_p7 = scmp.ne.s32.totalorder %s783_s14, %s538_s30  ;;  %s543_s24 = scalar_lea.hbm %s897_s1, 128 }
  0x34   : > { %p544_p13 = scmp.lt.u32.totalorder %s783_s14, %s897_s1  ;;  %p545_p1 = scmp.lt.u32.totalorder %s543_s24, %s538_s30 }
  0x35   : > { %p541_p8 = pnand %p539_p7, %p510_p0  ;;  %p547_p4 = scmp.lt.u32.totalorder %s538_s30, %s783_s14 }
  0x36   : > { %p546_p3 = por %p545_p1, %p544_p13 }
  0x37   : > { %p542_p9 = pneg %p541_p8 }
  0x38   : > { %p548_p5 = por %p547_p4, %p546_p3 }
  0x3a   : > { %p549_p10 = pnand %p548_p5, %p542_p9 }
  0x3c   : > { %552 = shalt.err (!%p549_p10)
}
  0x3d   : > { %s553_s25 = scalar_lea.vmem %s787_s17, 32  ;;  %s643_s7 = smov [#allocation5]  }
  0x3e   : > { %p554_p11 = scmp.ne.s32.totalorder %s787_s17, %s553_s25  ;;  %s558_s8 = sshll.u32 %s643_s7, 4  ;;  %s559_s8 = int_to_ptr.vmem [resolvable:$false] %s558_s8 }
  0x3f   : > { %s560_s16 = scalar_lea.vmem %s559_s8, 64  ;;  %p561_p6 = scmp.lt.s32.totalorder %s787_s17, %s559_s8 }
  0x40   : > { %p556_p7 = pnand %p554_p11, %p510_p0  ;;  %p562_p13 = scmp.lt.s32.totalorder %s560_s16, %s553_s25 }
  0x42   : > { %p557_p8 = pneg %p556_p7  ;;  %p563_p1 = por %p562_p13, %p561_p6 }
  0x44   : > { %p564_p3 = pnand %p563_p1, %p557_p8 }
  0x46   : > { %567 = shalt.err (!%p564_p3)
}
  0x47   : > { %449 = dma.hbm_to_vmem [thread:$0]  (!%p735_p12), %s783_s14, 32, %s787_s17, %s139_s28, %s641_s29, %s641_s29, %s642_s5  }
  0x48   : > { %161 = sbr.rel (%p774_p2) target bundleno = 433 (0x1b1), region = 28  ;;  %s821_s30 = sand.u32 (!%p774_p2), 1, %s630_s10  }
  0x49   : > { %s420_s4 = sshll.u32 (!%p774_p2), %s821_s30, 1  ;;  %s164_s19 = scalar_lea.sflag (!%p774_p2), [#allocation3], %s821_s30 }
  0x4a   : > { %s167_s3 = scalar_lea.vmem (!%p774_p2), [#allocation2], %s420_s4  ;;  %p907_p6 = scmp.ne.s32.totalorder (!%p774_p2), %s902_s20, 0 }
  0x4f   : > { %613 = dma.done.wait (%p907_p6), %s164_s19, 32  }
  0x50   : > { %615 = vsyncadd (%p907_p6), %s164_s19, 4294967264  ;;  %s173_s23 = scalar_lea.sflag [#allocation6], %s821_s30  ;;  %s176_s29 = scalar_lea.vmem [#allocation5], %s420_s4 }
  0x51   : > { %617 = dma.done.wait (%p907_p6), %s173_s23, 32  }
  0x52   : > { %619 = vsyncadd (%p907_p6), %s173_s23, 4294967264  ;;  %v209_v0 = vlaneseq  ;;  %v423_v6 = vld [vmem:[%s167_s3] ss:$0 sm:$0xff]  ;;  %v424_v7 = vld [vmem:[%s167_s3 + $0x1] ss:$0 sm:$0xff]  ;;  %vm250_vm0 = vcmask 130048  }
  0x53   : > { %v425_v10 = vld [vmem:[%s176_s29] ss:$0 sm:$0xff]  ;;  %v426_v11 = vld [vmem:[%s176_s29 + $0x1] ss:$0 sm:$0xff]  ;;  %s422_s20 = sshll.u32 %s821_s30, 5  ;;  %s436_s6 = sshll.u32 %s683_s13, 9 }
  0x54   : > { %v210_v1 = vshrl.u32 %v209_v0, 7  ;;  %s201_s5 = scalar_lea.vmem [#allocation7], %s422_s20  ;;  %s850_s24 = scalar_lea.hbm %s898_s2, %s436_s6 }
  0x55   : > { %s314_s14 = sshll.u32 %s201_s5, 4  ;;  %s300_s13 = scalar_lea.sflag [#allocation4], %s821_s30  ;;  %s852_s14 = int_to_ptr.vmem [resolvable:$true] %s314_s14 }
  0x56   : > { %v212_v2 = vcvt.s32.f32 %v210_v1  ;;  %v211_v3 = vadd.s32 8, %v210_v1  ;;  %s568_s26 = scalar_lea.vmem %s852_s14, 512  ;;  %p908_p0 = scmp.ne.s32.totalorder %s903_s21, 0 }
  0x57   : > { %p569_p12 = scmp.ne.s32.totalorder %s852_s14, %s568_s26  ;;  %s644_s27 = smov [#allocation7]  }
  0x58   : > { %v214_v4 = vmul.f32 2.0, %v212_v2  ;;  %v213_v5 = vcvt.s32.f32 %v211_v3  ;;  %s572_s25 = sshll.u32 %s644_s27, 4  ;;  %s573_s25 = int_to_ptr.vmem [resolvable:$false] %s572_s25 }
  0x59   : > { %p570_p2 = pnand %p569_p12, %p908_p0  ;;  %s574_s7 = scalar_lea.vmem %s573_s25, 1024 }
  0x5a   : > { %v216_v8 = vsub.f32 15.0, %v214_v4  ;;  %v215_v9 = vmul.f32 2.0, %v213_v5  ;;  %p575_p4 = scmp.lt.s32.totalorder %s852_s14, %s573_s25  ;;  %p576_p5 = scmp.lt.s32.totalorder %s574_s7, %s568_s26 }
  0x5b   : > { %p571_p9 = pneg %p570_p2 }
  0x5c   : > { %v230_v12 = vmul.f32 %v423_v6, %v216_v8  ;;  %v232_v13 = vmul.f32 %v424_v7, %v216_v8  ;;  %v217_v14 = vsub.f32 15.0, %v215_v9  ;;  %p577_p10 = por %p576_p5, %p575_p4 }
  0x5e   : > { %v246_v15 = vsub.f32 %v230_v12, %v425_v10  ;;  %v248_v16 = vsub.f32 %v232_v13, %v426_v11  ;;  %v231_v17 = vmul.f32 %v423_v6, %v217_v14  ;;  %v233_v18 = vmul.f32 %v424_v7, %v217_v14  ;;  %p578_p11 = pnand %p577_p10, %p571_p9 }
  0x60   : > { %v251_v19 = vsel %vm250_vm0, %v246_v15, -inf  ;;  %v257_v20 = vsel %vm250_vm0, %v248_v16, -inf  ;;  %v247_v21 = vsub.f32 %v231_v17, %v425_v10  ;;  %v249_v22 = vsub.f32 %v233_v18, %v426_v11 }
  0x61   : > { %252 = vmax.xlane.f32.xlu0 %v251_v19  ;;  %258 = vmax.xlane.f32.xlu1 %v257_v20 }
  0x62   : > { %v254_v23 = vsel %vm250_vm0, %v247_v21, -inf  ;;  %v260_v24 = vsel %vm250_vm0, %v249_v22, -inf }
  0x65   : > { %255 = vmax.xlane.f32.xlu0 %v254_v23  ;;  %261 = vmax.xlane.f32.xlu1 %v260_v24 }
  0xee   : > { %v253_v25 = vpop.xlane.xlu0 %252  ;;  %v259_v26 = vpop.xlane.xlu1 %258 }
  0xef   : > { %v263_v27 = vsub.f32 %v246_v15, %v253_v25  ;;  %v265_v28 = vsub.f32 %v248_v16, %v259_v26 }
  0xf1   : > { %v267_v29 = vmul.f32 1.442695, %v263_v27  ;;  %v271_v30 = vmul.f32 1.442695, %v265_v28 }
  0xf2   : > { %v256_v31 = vpop.xlane.xlu0 %255  ;;  %v262_v32 = vpop.xlane.xlu1 %261 }
  0xf3   : > { %492 = vpow2.f32 %v267_v29  ;;  %v264_v33 = vsub.f32 %v247_v21, %v256_v31  ;;  %v266_v34 = vsub.f32 %v249_v22, %v262_v32 }
  0xf4   : > { %494 = vpow2.f32 %v271_v30 }
  0xf5   : > { %v269_v35 = vmul.f32 1.442695, %v264_v33  ;;  %v273_v36 = vmul.f32 1.442695, %v266_v34 }
  0xf7   : > { %496 = vpow2.f32 %v269_v35 }
  0xf8   : > { %498 = vpow2.f32 %v273_v36 }
  0xfd   : > { %v493_v37 = vpop.eup %492 }
  0xfe   : > { %v495_v38 = vpop.eup %494  ;;  %v275_v39 = vsel %vm250_vm0, %v493_v37, 0.0 }
  0xff   : > { %276 = vadd.xlane.f32.xlu0 %v275_v39  ;;  %v281_v40 = vsel %vm250_vm0, %v495_v38, 0.0 }
 0x101   : > { %v497_v41 = vpop.eup %496 }
 0x102   : > { %v499_v42 = vpop.eup %498  ;;  %v278_v43 = vsel %vm250_vm0, %v497_v41, 0.0 }
 0x103   : > { %282 = vadd.xlane.f32.xlu0 %v281_v40  ;;  %279 = vadd.xlane.f32.xlu1 %v278_v43  ;;  %v284_v44 = vsel %vm250_vm0, %v499_v42, 0.0 }
 0x107   : > { %285 = vadd.xlane.f32.xlu1 %v284_v44 }
 0x18c   : > { %v277_v45 = vpop.xlane.xlu0 %276 }
 0x18d   : > { %500 = vrcp.f32 %v277_v45 }
 0x190   : > { %v280_v46 = vpop.xlane.xlu1 %279  ;;  %v283_v47 = vpop.xlane.xlu0 %282 }
 0x191   : > { %502 = vrcp.f32 %v280_v46 }
 0x192   : > { %504 = vrcp.f32 %v283_v47 }
 0x194   : > { %v286_v48 = vpop.xlane.xlu1 %285 }
 0x195   : > { %506 = vrcp.f32 %v286_v48 }
 0x197   : > { %v501_v49 = vpop.eup %500 }
 0x198   : > { %v291_v50 = vmul.f32 %v501_v49, %v493_v37 }
 0x19a   : > { %295 = vst.msk [vmem:[%s201_s5] sm:$0xff] %vm250_vm0, %v291_v50 }
 0x19b   : > { %v503_v51 = vpop.eup %502 }
 0x19c   : > { %v505_v52 = vpop.eup %504  ;;  %v292_v53 = vmul.f32 %v503_v51, %v497_v41 }
 0x19d   : > { %v293_v54 = vmul.f32 %v505_v52, %v495_v38 }
 0x19e   : > { %296 = vst.msk [vmem:[%s201_s5 + $0x8] sm:$0xff] %vm250_vm0, %v292_v53 }
 0x19f   : > { %v507_v55 = vpop.eup %506  ;;  %297 = vst.msk [vmem:[%s201_s5 + $0x10] sm:$0xff] %vm250_vm0, %v293_v54 }
 0x1a0   : > { %v294_v56 = vmul.f32 %v507_v55, %v499_v42 }
 0x1a2   : > { %298 = vst.msk [vmem:[%s201_s5 + $0x18] sm:$0xff] %vm250_vm0, %v294_v56 }
 0x1a3   : > { %581 = shalt.err (!%p578_p11)
}
 0x1a4   : > { %s582_s8 = scalar_lea.hbm %s850_s24, 512  ;;  %s586_s19 = scalar_lea.hbm %s898_s2, 2048 }
 0x1a5   : > { %p583_p7 = scmp.ne.s32.totalorder %s850_s24, %s582_s8  ;;  %p587_p1 = scmp.lt.u32.totalorder %s850_s24, %s898_s2 }
 0x1a6   : > { %p588_p3 = scmp.lt.u32.totalorder %s586_s19, %s582_s8  ;;  %p590_p12 = scmp.lt.u32.totalorder %s582_s8, %s850_s24 }
 0x1a7   : > { %p584_p8 = pnand %p583_p7, %p908_p0 }
 0x1a8   : > { %p589_p6 = por %p588_p3, %p587_p1 }
 0x1a9   : > { %p585_p13 = pneg %p584_p8 }
 0x1aa   : > { %p591_p2 = por %p590_p12, %p589_p6 }
 0x1ac   : > { %p592_p9 = pnand %p591_p2, %p585_p13 }
 0x1ae   : > { %595 = shalt.err (!%p592_p9)
}
 0x1af   : > { %s645_s29 = smov 128   ;;  %s646_s20 = smov 8  }
 0x1b0   : > { %441 = dma.vmem_to_hbm [thread:$0]  (%p908_p0), %s852_s14, 512, %s850_s24, %s300_s13, %s645_s29, %s645_s29, %s646_s20  }
 0x1b1 PF: > { %p455_p4 = scmp.ge.s32.totalorder %s638_s12, 2  ;;  %s329_s5 = sand.u32 1, %s626_s9  }
 0x1b2   : > { %p909_p5 = scmp.ne.s32.totalorder %s904_s22, 0  ;;  %s330_s6 = scalar_lea.sflag [#allocation4], %s329_s5 }
 0x1b4   : > { %p451_p10 = pnand %p455_p4, %p909_p5 }
 0x1b6   : > { %621 = dma.done.wait (!%p451_p10), %s330_s6, 512  }
 0x1b7   : > { %623 = vsyncadd (!%p451_p10), %s330_s6, 4294966784  ;;  %p18_p11 = scmp.ge.s32.totalorder %s687_s15, 6   ;;  %s910_s9 = smov %s630_s10 }
 0x1b8   : > { %s911_s10 = smov %s634_s11  ;;  %s912_s11 = smov %s699_s18 }
 0x1b9   : > { %s913_s12 = smov %s687_s15  ;;  %20 = sbr.rel (!%p18_p11) target bundleno = 7 (0x7), region = 86 }
 0x1c0   :  { %335 = vsyncpa [#allocation3], 1 }
 0x1c1   :  { %337 = vsyncpa [#allocation3 + $0x1], 1 }
 0x1c2   :  { %338 = vsyncpa [#allocation6], 1 }
 0x1c3   :  { %340 = vsyncpa [#allocation6 + $0x1], 1 }
 0x1c4   :  { %341 = vsyncpa [#allocation4], 1 }
 0x1c5   :  { %343 = vsyncpa [#allocation4 + $0x1], 1 }

</bundles_post_ra>
